<compile_context>
chip_gen: v7x
topology: tpu7x:2x2x1
jax: 0.10.0
libtpu: 0.0.40
codegen_flags: <defaults>
</compile_context>

<pallas_src>
import functools

import jax
import jax.numpy as jnp
from jax.experimental import pallas as pl
from jax.experimental.pallas import tpu as pltpu

LANE = 128      # TPU lane width (fast axis)
SUBLANE = 8     # TPU sublane width


def _round_up(n, m):
    return ((n + m - 1) // m) * m


def _cdiv(a, b):
    return -(-a // b)


def dqn_kernel(x_ref, w1_ref, w23_ref, b_ref, o_ref):
    """One batch tile: fc1+ReLU -> fc2+ReLU -> fc3 (dropout = identity, eval)."""
    h_pad = w1_ref.shape[1]                       # padded hidden width (128-mult)
    b = b_ref[...].astype(jnp.float32)            # (3, C) bias slab, one vreg load

    # fc1 + ReLU
    h1 = jnp.dot(x_ref[...].astype(w1_ref.dtype), w1_ref[...],
                 preferred_element_type=jnp.float32)
    h1 = jnp.maximum(h1 + b[0:1, :h_pad], 0.0)

    # fc2 + ReLU
    w2 = w23_ref[0][:, :h_pad]
    h2 = jnp.dot(h1.astype(w23_ref.dtype), w2,
                 preferred_element_type=jnp.float32)
    h2 = jnp.maximum(h2 + b[1:2, :h_pad], 0.0)

    # fc3 (no activation); padded output lanes keep their (zero) bias value
    out = jnp.dot(h2.astype(w23_ref.dtype), w23_ref[1],
                  preferred_element_type=jnp.float32) + b[2:3, :]
    o_ref[...] = out.astype(o_ref.dtype)


def init_params(key, state_size, action_size, hidden_size=64):
    """Logical (unpadded) params matching nn.Linear's U(-1/sqrt(fan_in), .) init.

    Weights are stored (in_features, out_features) so the kernel does x @ W.
    """
    def linear(k, fan_in, fan_out):
        kw, kb = jax.random.split(k)
        bound = 1.0 / jnp.sqrt(float(fan_in))
        w = jax.random.uniform(kw, (fan_in, fan_out), jnp.float32, -bound, bound)
        b = jax.random.uniform(kb, (1, fan_out), jnp.float32, -bound, bound)
        return w, b

    k1, k2, k3 = jax.random.split(key, 3)
    w1, b1 = linear(k1, state_size, hidden_size)
    w2, b2 = linear(k2, hidden_size, hidden_size)
    w3, b3 = linear(k3, hidden_size, action_size)
    return {"w1": w1, "b1": b1, "w2": w2, "b2": b2, "w3": w3, "b3": b3}


def pad_params(params, dtype=jnp.bfloat16):
    """Pack params into 3 zero-padded slabs for the kernel.

      w1  : (round_up(S, 8), H_pad)            -- state dim only sublane-rounded
      w23 : (2, H_pad, C)   slot 0 = fc2 W, slot 1 = fc3 W (cols zero-padded)
      b   : (3, C)          rows = fc1/fc2/fc3 biases (zero-padded)

    with H_pad = round_up(hidden, 128), C = max(H_pad, round_up(action, 128)).
    Zero padding preserves the forward exactly (zero K-rows, ReLU(0)=0, zero bias).
    dtype=bf16 halves weight HBM->VMEM bytes; accumulation stays f32 in-kernel.
    """
    w1, b1 = params["w1"], params["b1"]
    w2, b2 = params["w2"], params["b2"]
    w3, b3 = params["w3"], params["b3"]
    S, H = w1.shape
    A = w3.shape[1]
    S_pad = _round_up(S, SUBLANE)
    H_pad = _round_up(H, LANE)
    A_pad = _round_up(A, LANE)
    C = max(H_pad, A_pad)

    w1_p = jnp.zeros((S_pad, H_pad), dtype).at[:S, :H].set(w1.astype(dtype))

    w23 = jnp.zeros((2, H_pad, C), dtype)
    w23 = w23.at[0, :H, :H].set(w2.astype(dtype))
    w23 = w23.at[1, :H, :A].set(w3.astype(dtype))

    b = jnp.zeros((3, C), dtype)
    b = b.at[0, :H].set(b1.reshape(-1).astype(dtype))
    b = b.at[1, :H].set(b2.reshape(-1).astype(dtype))
    b = b.at[2, :A].set(b3.reshape(-1).astype(dtype))

    return {"w1": w1_p, "w23": w23, "b": b}


def _choose_batch_tiling(B, max_tile=1024):
    """tile_b multiple of 8, <= max_tile, with minimal batch padding; >=2 grid
    steps for batches big enough to benefit from v7x's 2 TensorCores."""
    n_steps = max(1, _cdiv(B, max_tile))
    if n_steps == 1 and B > 256:
        n_steps = 2
    tile_b = _round_up(_cdiv(B, n_steps), SUBLANE)
    return tile_b, tile_b * n_steps


@functools.partial(jax.jit, static_argnames=("action_size", "max_tile"))
def dqn_forward(x, padded_params, *, action_size, max_tile=1024):
    """x: (B, state_size) f32.  padded_params: output of pad_params()."""
    w1, w23, b = padded_params["w1"], padded_params["w23"], padded_params["b"]
    B, S = x.shape
    S_pad, H_pad = w1.shape
    C = w23.shape[2]

    tile_b, B_pad = _choose_batch_tiling(B, max_tile)
    # Only pad when necessary (avoids an extra HBM read+write of x).
    if B_pad != B or S_pad != S:
        x = jnp.pad(x, ((0, B_pad - B), (0, S_pad - S)))

    grid = (B_pad // tile_b,)

    flops = 2 * B_pad * (S_pad * H_pad + H_pad * H_pad + H_pad * C)
    bytes_accessed = (
        B_pad * S_pad * x.dtype.itemsize
        + sum(p.size * p.dtype.itemsize for p in (w1, w23, b))
        + B_pad * C * 4
    )

    out = pl.pallas_call(
        dqn_kernel,
        out_shape=jax.ShapeDtypeStruct((B_pad, C), jnp.float32),
        grid=grid,
        in_specs=[
            # activations: tiled & pipelined over the batch grid (lane dim = full S)
            pl.BlockSpec((tile_b, S_pad), lambda i: (i, 0)),
            # weight / bias slabs: constant index_map -> DMA'd once, VMEM-resident
            pl.BlockSpec(w1.shape, lambda i: (0, 0)),
            pl.BlockSpec(w23.shape, lambda i: (0, 0, 0)),
            pl.BlockSpec(b.shape, lambda i: (0, 0)),
        ],
        # lane-dense (tile_b, 128*k) output block -> unmasked stores
        out_specs=pl.BlockSpec((tile_b, C), lambda i: (i, 0)),
        compiler_params=pltpu.CompilerParams(
            dimension_semantics=("parallel",),   # shard batch steps across 2 TCs on v7x
        ),
        cost_estimate=pl.CostEstimate(
            flops=flops, transcendentals=0, bytes_accessed=bytes_accessed),
    )(x, w1, w23, b)

    # Slice padded batch rows / action lanes back off.
    return out[:B, :action_size]


if __name__ == "__main__":
    state_size = 16
    action_size = 3
    hidden_size = 64
    batch = 8

    key = jax.random.PRNGKey(0)
    kx, kp = jax.random.split(key)
    x = jax.random.normal(kx, (batch, state_size), jnp.float32)

    params = init_params(kp, state_size, action_size, hidden_size)
    # bf16 weight slabs (default): half the weight DMA bytes, bf16 MXU on v6e/v7x.
    padded = pad_params(params, dtype=jnp.bfloat16)

    out = dqn_forward(x, padded, action_size=action_size)
    jax.block_until_ready(out)

    # pure-JAX f32 reference of the same eval-mode forward (unpadded params)
    ref = jnp.maximum(x @ params["w1"] + params["b1"], 0.0)
    ref = jnp.maximum(ref @ params["w2"] + params["b2"], 0.0)
    ref = ref @ params["w3"] + params["b3"]

    assert out.shape == (batch, action_size)
    # tolerance loosened for bf16 weights (f32 accumulation in-kernel)
    max_err = float(jnp.max(jnp.abs(out - ref)))
    assert jnp.allclose(out, ref, atol=5e-2, rtol=5e-2), max_err

    print("KERNEL_OK")
</pallas_src>

<mosaic_0001>
module attributes {stable_mosaic.version = 11 : i64} {
  func.func @dqn_kernel(%arg0: i32, %arg1: memref<8x16xf32, #tpu.memory_space<vmem>>, %arg2: memref<16x128xbf16, #tpu.memory_space<vmem>>, %arg3: memref<2x128x128xbf16, #tpu.memory_space<vmem>>, %arg4: memref<3x128xbf16, #tpu.memory_space<vmem>>, %arg5: memref<8x128xf32, #tpu.memory_space<vmem>>) attributes {dimension_semantics = [#tpu.dimension_semantics<parallel>], iteration_bounds = array<i64: 1>, scalar_prefetch = 0 : i64, scratch_operands = 0 : i64, tpu.core_type = #tpu.core_type<tc>, window_params = [{transform_indices = @transform_0, window_bounds = array<i64: 8, 16>}, {pipeline_mode = #tpu.pipeline_mode<synchronous>, transform_indices = @transform_1, window_bounds = array<i64: 16, 128>}, {pipeline_mode = #tpu.pipeline_mode<synchronous>, transform_indices = @transform_2, window_bounds = array<i64: 2, 128, 128>}, {pipeline_mode = #tpu.pipeline_mode<synchronous>, transform_indices = @transform_3, window_bounds = array<i64: 3, 128>}, {transform_indices = @transform_4, window_bounds = array<i64: 8, 128>}]} {
    %c0 = arith.constant 0 : index
    %c0_0 = arith.constant 0 : index
    %0 = vector.load %arg4[%c0, %c0_0] : memref<3x128xbf16, #tpu.memory_space<vmem>>, vector<3x128xbf16>
    %1 = arith.extf %0 : vector<3x128xbf16> to vector<3x128xf32>
    %c0_1 = arith.constant 0 : index
    %c0_2 = arith.constant 0 : index
    %2 = vector.load %arg1[%c0_1, %c0_2] : memref<8x16xf32, #tpu.memory_space<vmem>>, vector<8x16xf32>
    %3 = arith.truncf %2 : vector<8x16xf32> to vector<8x16xbf16>
    %c0_3 = arith.constant 0 : index
    %c0_4 = arith.constant 0 : index
    %4 = vector.load %arg2[%c0_3, %c0_4] : memref<16x128xbf16, #tpu.memory_space<vmem>>, vector<16x128xbf16>
    %cst = arith.constant dense<0.000000e+00> : vector<8x128xf32>
    %5 = tpu.matmul %3, %4, %cst {dimension_numbers = #tpu.dot_dimension_numbers<[1], [0], [0], [1], [0, 0, 1, 1], [], []>} : vector<8x16xbf16>, vector<16x128xbf16>, vector<8x128xf32> -> vector<8x128xf32>
    %6 = vector.extract_strided_slice %1 {offsets = [0, 0], sizes = [1, 128], strides = [1, 1]} : vector<3x128xf32> to vector<1x128xf32>
    %7 = vector.broadcast %6 : vector<1x128xf32> to vector<8x128xf32>
    %8 = arith.addf %5, %7 : vector<8x128xf32>
    %cst_5 = arith.constant 0.000000e+00 : f32
    %9 = vector.broadcast %cst_5 : f32 to vector<8x128xf32>
    %10 = arith.maximumf %8, %9 : vector<8x128xf32>
    %c0_6 = arith.constant 0 : index
    %c0_7 = arith.constant 0 : index
    %c0_8 = arith.constant 0 : index
    %11 = vector.load %arg3[%c0_6, %c0_7, %c0_8] : memref<2x128x128xbf16, #tpu.memory_space<vmem>>, vector<1x128x128xbf16>
    %12 = vector.shape_cast %11 : vector<1x128x128xbf16> to vector<128x128xbf16>
    %13 = arith.truncf %10 : vector<8x128xf32> to vector<8x128xbf16>
    %cst_9 = arith.constant dense<0.000000e+00> : vector<8x128xf32>
    %14 = tpu.matmul %13, %12, %cst_9 {dimension_numbers = #tpu.dot_dimension_numbers<[1], [0], [0], [1], [0, 0, 1, 1], [], []>} : vector<8x128xbf16>, vector<128x128xbf16>, vector<8x128xf32> -> vector<8x128xf32>
    %15 = vector.extract_strided_slice %1 {offsets = [1, 0], sizes = [1, 128], strides = [1, 1]} : vector<3x128xf32> to vector<1x128xf32>
    %16 = vector.broadcast %15 : vector<1x128xf32> to vector<8x128xf32>
    %17 = arith.addf %14, %16 : vector<8x128xf32>
    %cst_10 = arith.constant 0.000000e+00 : f32
    %18 = vector.broadcast %cst_10 : f32 to vector<8x128xf32>
    %19 = arith.maximumf %17, %18 : vector<8x128xf32>
    %20 = arith.truncf %19 : vector<8x128xf32> to vector<8x128xbf16>
    %c1 = arith.constant 1 : index
    %c0_11 = arith.constant 0 : index
    %c0_12 = arith.constant 0 : index
    %21 = vector.load %arg3[%c1, %c0_11, %c0_12] : memref<2x128x128xbf16, #tpu.memory_space<vmem>>, vector<1x128x128xbf16>
    %22 = vector.shape_cast %21 : vector<1x128x128xbf16> to vector<128x128xbf16>
    %cst_13 = arith.constant dense<0.000000e+00> : vector<8x128xf32>
    %23 = tpu.matmul %20, %22, %cst_13 {dimension_numbers = #tpu.dot_dimension_numbers<[1], [0], [0], [1], [0, 0, 1, 1], [], []>} : vector<8x128xbf16>, vector<128x128xbf16>, vector<8x128xf32> -> vector<8x128xf32>
    %24 = vector.extract_strided_slice %1 {offsets = [2, 0], sizes = [1, 128], strides = [1, 1]} : vector<3x128xf32> to vector<1x128xf32>
    %25 = vector.broadcast %24 : vector<1x128xf32> to vector<8x128xf32>
    %26 = arith.addf %23, %25 : vector<8x128xf32>
    %c0_14 = arith.constant 0 : index
    %c0_15 = arith.constant 0 : index
    %27 = vector.load %arg5[%c0_14, %c0_15] : memref<8x128xf32, #tpu.memory_space<vmem>>, vector<8x128xf32>
    tpu.vector_store %arg5[%c0_14, %c0_15], %26 {strides = array<i32>} : memref<8x128xf32, #tpu.memory_space<vmem>>, vector<8x128xf32>,
    return
  }
  func.func @transform_0(%arg0: i32) -> (i32, i32) {
    %c0_i32 = arith.constant 0 : i32
    %c0_i32_0 = arith.constant 0 : i32
    return %arg0, %c0_i32 : i32, i32
  }
  func.func @transform_1(%arg0: i32) -> (i32, i32) {
    %c0_i32 = arith.constant 0 : i32
    %c0_i32_0 = arith.constant 0 : i32
    %c0_i32_1 = arith.constant 0 : i32
    return %c0_i32, %c0_i32_0 : i32, i32
  }
  func.func @transform_2(%arg0: i32) -> (i32, i32, i32) {
    %c0_i32 = arith.constant 0 : i32
    %c0_i32_0 = arith.constant 0 : i32
    %c0_i32_1 = arith.constant 0 : i32
    %c0_i32_2 = arith.constant 0 : i32
    return %c0_i32, %c0_i32_0, %c0_i32_1 : i32, i32, i32
  }
  func.func @transform_3(%arg0: i32) -> (i32, i32) {
    %c0_i32 = arith.constant 0 : i32
    %c0_i32_0 = arith.constant 0 : i32
    %c0_i32_1 = arith.constant 0 : i32
    return %c0_i32, %c0_i32_0 : i32, i32
  }
  func.func @transform_4(%arg0: i32) -> (i32, i32) {
    %c0_i32 = arith.constant 0 : i32
    %c0_i32_0 = arith.constant 0 : i32
    return %arg0, %c0_i32 : i32, i32
  }
}

</mosaic_0001>

<bundles_post_ra>
// kernel: dqn_forward.1
= control target key start
LH: loop header
LB: loop body
LE: loop exit
PB: predicated region body
PF: predicated region fallthrough
CT: control target
= control target key end

     0   :  { %9 = vsyncpa [#allocation3], 0  ;;  %s623_s0 = inlined_call_operand.hbm [shape: f32[8,16], index: 0, kind: input, shape index: {}]   ;;  %s624_s1 = inlined_call_operand.hbm [shape: bf16[16,128], index: 1, kind: input, shape index: {}]   ;;  %s625_s2 = inlined_call_operand.hbm [shape: bf16[2,128,128], index: 2, kind: input, shape index: {}]   ;;  %s626_s3 = inlined_call_operand.vmem [shape: bf16[3,128], index: 3, kind: input, shape index: {}]   ;;  %s627_s4 = inlined_call_operand.vmem [shape: f32[8,128], index: 4, kind: output, shape index: {}]  }
   0x1   :  { %10 = vsyncpa [#allocation5], 0  ;;  %s523_s15 = smov [#allocation4]   ;;  %s453_s19 = scalar_lea.hbm %s624_s1, 128 }
   0x2   :  { %s26_s16 = sshll.u32 %s523_s15, 4  ;;  %p454_p0 = scmp.ne.s32.totalorder %s624_s1, %s453_s19  ;;  %s27_s16 = int_to_ptr.vmem [resolvable:$true] %s26_s16 }
   0x3   :  { %p457_p1 = scmp.lt.u32.totalorder %s453_s19, %s624_s1 }
   0x5   :  { %p459_p2 = pnand %p457_p1, %p454_p0 }
   0x7   :  { %462 = shalt.err (!%p459_p2)
}
   0x8   :  { %s463_s24 = scalar_lea.vmem %s27_s16, 128  ;;  %p468_p4 = scmp.lt.s32.totalorder %s27_s16, %s27_s16 }
   0x9   :  { %p464_p3 = scmp.ne.s32.totalorder %s27_s16, %s463_s24  ;;  %p469_p5 = scmp.lt.s32.totalorder %s463_s24, %s463_s24 }
   0xb   :  { %p470_p6 = por %p469_p5, %p468_p4 }
   0xd   :  { %p471_p7 = pnand %p470_p6, %p464_p3 }
   0xf   :  { %474 = shalt.err (!%p471_p7)
}
  0x10   :  { %s524_s25 = smov 64   ;;  %s525_s26 = smov 4  }
  0x11   :  { %32 = dma.hbm_to_vmem [thread:$0]  %s624_s1, 128, %s27_s16, [#allocation5], %s524_s25, %s524_s25, %s525_s26  }
  0x12   :  { %s526_s29 = smov [#allocation2]   ;;  %s527_s5 = smov [#allocation6]  }
  0x13   :  { %s17_s30 = sshll.u32 %s526_s29, 4  ;;  %s38_s6 = sshll.u32 %s527_s5, 4  ;;  %s18_s30 = int_to_ptr.vmem [resolvable:$true] %s17_s30  ;;  %s39_s6 = int_to_ptr.vmem [resolvable:$true] %s38_s6 }
  0x14   :  { %s475_s9 = scalar_lea.hbm %s623_s0, 128 }
  0x15   :  { %p476_p8 = scmp.ne.s32.totalorder %s623_s0, %s475_s9  ;;  %p479_p9 = scmp.lt.u32.totalorder %s475_s9, %s623_s0 }
  0x17   :  { %p481_p10 = pnand %p479_p9, %p476_p8 }
  0x19   :  { %484 = shalt.err (!%p481_p10)
}
  0x1a   :  { %s485_s1 = scalar_lea.vmem %s18_s30, 128  ;;  %p490_p12 = scmp.lt.s32.totalorder %s18_s30, %s18_s30 }
  0x1b   :  { %p486_p11 = scmp.ne.s32.totalorder %s18_s30, %s485_s1  ;;  %p491_p13 = scmp.lt.s32.totalorder %s485_s1, %s485_s1 }
  0x1d   :  { %p492_p0 = por %p491_p13, %p490_p12 }
  0x1f   :  { %p493_p1 = pnand %p492_p0, %p486_p11 }
  0x21   :  { %496 = shalt.err (!%p493_p1)
}
  0x22   :  { %20 = dma.hbm_to_vmem [thread:$0]  %s623_s0, 128, %s18_s30, [#allocation3]  }
  0x23   :  { %s497_s18 = scalar_lea.hbm %s625_s2, 2048 }
  0x24   :  { %p498_p2 = scmp.ne.s32.totalorder %s625_s2, %s497_s18  ;;  %p501_p3 = scmp.lt.u32.totalorder %s497_s18, %s625_s2 }
  0x26   :  { %p503_p4 = pnand %p501_p3, %p498_p2 }
  0x28   :  { %506 = shalt.err (!%p503_p4)
}
  0x29   :  { %s507_s23 = scalar_lea.vmem %s39_s6, 2048  ;;  %p512_p6 = scmp.lt.s32.totalorder %s39_s6, %s39_s6 }
  0x2a   :  { %p508_p5 = scmp.ne.s32.totalorder %s39_s6, %s507_s23  ;;  %p513_p7 = scmp.lt.s32.totalorder %s507_s23, %s507_s23 }
  0x2c   :  { %p514_p8 = por %p513_p7, %p512_p6 }
  0x2e   :  { %p515_p9 = pnand %p514_p8, %p508_p5 }
  0x30   :  { %518 = shalt.err (!%p515_p9)
}
  0x31   :  { %44 = dma.hbm_to_vmem [thread:$0]  %s625_s2, 2048, %s39_s6, [#allocation5], %s524_s25, %s524_s25, %s525_s26  }
  0x32   :  { %519 = dma.done.wait [#allocation3], 128  }
  0x33   :  { %520 = vsyncadd [#allocation3], 4294967168 }
  0x34   :  { %521 = dma.done.wait [#allocation5], 2176  }
  0x35   :  { %522 = vsyncadd [#allocation5], 4294965120  ;;  %v528_v0 = vmov 0.0   ;;  %vm529_vm0 = vmmov 0   ;;  %v436_v1 = vld [vmem:[#allocation4] sm:$0xff]   ;;  %v59_v2 = vld [vmem:[#allocation2] sm:$0xff]  ;;  %v63_v18 = vlaneseq }
  0x36   :  { %383 = vmatprep.subr.bf16.mxu0 %v528_v0  ;;  %385 = vmatprep.mubr.msk.bf16.mxu0 %vm529_vm0, %v528_v0  ;;  %v60_v3 = vpack.c.bf16 %v59_v2, %v59_v2  ;;  %vm73_vm1 = vcmask 130048   ;;  %v437_v4 = vld [vmem:[#allocation6] sm:$0xff]   ;;  %v438_v5 = vld [vmem:[#allocation6 + $0x8] sm:$0xff]   ;;  %v439_v6 = vld [vmem:[#allocation6 + $0x10] sm:$0xff]  }
  0x37   :  { %389 = vmatprep.subr.bf16.mxu1 %v528_v0  ;;  %405 = vmatprep.mubr.msk.bf16.mxu1 %vm529_vm0, %v528_v0  ;;  %v440_v7 = vld [vmem:[#allocation6 + $0x18] sm:$0xff]   ;;  %v441_v8 = vld [vmem:[#allocation6 + $0x20] sm:$0xff]   ;;  %v442_v9 = vld [vmem:[#allocation6 + $0x28] sm:$0xff]   ;;  %v64_v19 = vshrl.u32 %v63_v18, 7 }
  0x38   :  { %384 = vmatpush3.bf16.msra.mxu0 %v436_v1  ;;  %390 = vmatpush3.bf16.msra.mxu1 %v437_v4  ;;  %v443_v10 = vld [vmem:[#allocation6 + $0x30] sm:$0xff]   ;;  %v444_v11 = vld [vmem:[#allocation6 + $0x38] sm:$0xff]   ;;  %v445_v12 = vld [vmem:[#allocation6 + $0x40] sm:$0xff]  }
  0x39   :  { %409 = vmatprep.subr.bf16.mxu0 %v528_v0  ;;  %391 = vmatprep.subr.bf16.mxu1 %v528_v0  ;;  %v446_v13 = vld [vmem:[#allocation6 + $0x48] sm:$0xff]   ;;  %v447_v14 = vld [vmem:[#allocation6 + $0x50] sm:$0xff]   ;;  %v448_v15 = vld [vmem:[#allocation6 + $0x58] sm:$0xff]   ;;  %v65_v22 = vsub.s32 0, %v64_v19  ;;  %v137_v33 = vsub.s32 1, %v64_v19  ;;  %v248_v42 = vsub.s32 2, %v64_v19 }
  0x3a   :  { %v449_v16 = vld [vmem:[#allocation6 + $0x60] sm:$0xff]   ;;  %v450_v17 = vld [vmem:[#allocation6 + $0x68] sm:$0xff]   ;;  %v57_v20 = vld [vmem:[%s626_s3] sm:$0x3] }
  0x3b   :  { %386 = vmatmul.mubr.msk.bf16.vlgmr.msra.gmra.mrb[0].mxu0 %vm73_vm1, %v60_v3  ;;  %v58_v21 = vunpack.c.l.bf16 %v57_v20  ;;  %v451_v31 = vld [vmem:[#allocation6 + $0x70] sm:$0xff]   ;;  %v452_v32 = vld [vmem:[#allocation6 + $0x78] sm:$0xff]  }
  0x3c   :  { %425 = vmatprep.mubr.msk.bf16.mxu0 %vm529_vm0, %v528_v0  ;;  %392 = vmatpush3.bf16.msra.mxu1 %v438_v5 }
  0x3d   :  { %393 = vmatprep.subr.bf16.mxu1 %v528_v0  ;;  %410 = vmatpush3.bf16.msra.mxu0 %v445_v12  ;;  %v66_v23 = vrot.slane %v58_v21, %v65_v22  ;;  %v138_v34 = vrot.slane %v58_v21, %v137_v33  ;;  %v249_v43 = vrot.slane %v58_v21, %v248_v42 }
  0x3e   :  { %411 = vmatprep.subr.bf16.mxu0 %v528_v0 }
  0x40   :  { %394 = vmatpush3.bf16.msra.mxu1 %v439_v6 }
  0x41   :  { %395 = vmatprep.subr.bf16.mxu1 %v528_v0  ;;  %412 = vmatpush3.bf16.msra.mxu0 %v446_v13 }
  0x42   :  { %413 = vmatprep.subr.bf16.mxu0 %v528_v0 }
  0x44   :  { %396 = vmatpush3.bf16.msra.mxu1 %v440_v7 }
  0x45   :  { %397 = vmatprep.subr.bf16.mxu1 %v528_v0  ;;  %414 = vmatpush3.bf16.msra.mxu0 %v447_v14 }
  0x46   :  { %415 = vmatprep.subr.bf16.mxu0 %v528_v0 }
  0x48   :  { %398 = vmatpush3.bf16.msra.mxu1 %v441_v8 }
  0x49   :  { %399 = vmatprep.subr.bf16.mxu1 %v528_v0  ;;  %416 = vmatpush3.bf16.msra.mxu0 %v448_v15 }
  0x4a   :  { %417 = vmatprep.subr.bf16.mxu0 %v528_v0 }
  0x4c   :  { %400 = vmatpush3.bf16.msra.mxu1 %v442_v9 }
  0x4d   :  { %401 = vmatprep.subr.bf16.mxu1 %v528_v0  ;;  %418 = vmatpush3.bf16.msra.mxu0 %v449_v16 }
  0x4e   :  { %419 = vmatprep.subr.bf16.mxu0 %v528_v0 }
  0x50   :  { %402 = vmatpush3.bf16.msra.mxu1 %v443_v10 }
  0x51   :  { %403 = vmatprep.subr.bf16.mxu1 %v528_v0  ;;  %420 = vmatpush3.bf16.msra.mxu0 %v450_v17 }
  0x52   :  { %421 = vmatprep.subr.bf16.mxu0 %v528_v0 }
  0x54   :  { %404 = vmatpush3.bf16.msra.mxu1 %v444_v11 }
  0x55   :  { %422 = vmatpush3.bf16.msra.mxu0 %v451_v31 }
  0x56   :  { %423 = vmatprep.subr.bf16.mxu0 %v528_v0 }
  0x59   :  { %424 = vmatpush3.bf16.msra.mxu0 %v452_v32 }
 0x10e   :  { %v111_v24 = vpop.f32.mrb[0].mxu0 }
 0x10f   :  { %v112_v25 = vadd.f32 %v111_v24, %v66_v23  ;;  %v387_v26 = vpop.f32.mrb[1].mxu0 }
 0x110   :  { %v114_v27 = vpop.f32.mrb[2].mxu0 }
 0x111   :  { %v117_v28 = vmax.f32 %v112_v25, 0.0  ;;  %v388_v29 = vpop.f32.mrb[3].mxu0 }
 0x113   :  { %v134_v30 = vpack.c.bf16 %v117_v28, %v117_v28 }
 0x115   :  { %406 = vmatmul.mubr.bf16.vlgmr.msra.gmra.mrb[0].mxu1 %v134_v30 }
 0x1e8   :  { %v221_v35 = vpop.f32.mrb[0].mxu1 }
 0x1e9   :  { %v222_v36 = vadd.f32 %v221_v35, %v138_v34  ;;  %v407_v37 = vpop.f32.mrb[1].mxu1 }
 0x1ea   :  { %v224_v38 = vpop.f32.mrb[2].mxu1 }
 0x1eb   :  { %v227_v39 = vmax.f32 %v222_v36, 0.0  ;;  %v408_v40 = vpop.f32.mrb[3].mxu1 }
 0x1ed   :  { %v228_v41 = vpack.c.bf16 %v227_v39, %v227_v39 }
 0x1ef   :  { %426 = vmatmul.mubr.bf16.vlgmr.msra.gmra.mrb[4].mxu0 %v228_v41 }
 0x2c2   :  { %v332_v44 = vpop.f32.mrb[4].mxu0 }
 0x2c3   :  { %v333_v45 = vadd.f32 %v332_v44, %v249_v43  ;;  %v427_v46 = vpop.f32.mrb[5].mxu0 }
 0x2c4   :  { %v335_v47 = vpop.f32.mrb[6].mxu0 }
 0x2c5   :  { %338 = vst [vmem:[%s627_s4] sm:$0xff] %v333_v45  ;;  %v428_v48 = vpop.f32.mrb[7].mxu0 }
 0x2c6   :  { %343 = vsyncpa [#allocation3], 1 }
 0x2c7   :  { %344 = vsyncpa [#allocation5], 1 }

</bundles_post_ra>
